<compile_context>
chip_gen: v7x
topology: tpu7x:2x2x1
jax: 0.10.0
libtpu: 0.0.40
codegen_flags: <defaults>
</compile_context>

<pallas_src>
import functools

import jax
import jax.numpy as jnp
from jax import lax
from jax.experimental import pallas as pl
from jax.experimental.pallas import tpu as pltpu


def _bert_classifier_kernel(x_ref, w_ref, b_ref, o_ref, *, compute_dtype):
    """Fused linear + bias + ReLU on one batch tile.

    x_ref : (tm, K)  activations tile
    w_ref : (N, K)   weight in PyTorch nn.Linear layout (out, in)
    b_ref : (1, N)   bias
    o_ref : (tm, N)  output tile
    """
    x = x_ref[...]
    w = w_ref[...]
    if compute_dtype is not None:
        # MXU-side narrow cast only (no extra HBM pass in the wrapper).
        x = x.astype(compute_dtype)
        w = w.astype(compute_dtype)

    # x @ w.T with the contraction dim (768) on the lane axis of BOTH
    # operands -- native MXU mapping, f32 accumulation.
    y = lax.dot_general(
        x,
        w,
        dimension_numbers=(((1,), (1,)), ((), ())),
        preferred_element_type=jnp.float32,
    )
    y = y + b_ref[...].astype(jnp.float32)   # bias broadcast (1, N) -> (tm, N)
    o_ref[...] = jnp.maximum(y, 0.0).astype(o_ref.dtype)


def _round_up(v, m):
    return ((v + m - 1) // m) * m


def _choose_batch_tile(batch, block_m):
    """Pick the M tile: whole batch if small, else block_m nudged so the
    number of grid steps is even (both v7x TensorCores get work)."""
    if batch <= block_m:
        return batch
    tm = block_m
    n_steps = -(-batch // tm)
    if n_steps % 2 == 1:
        tm_even = _round_up(-(-batch // (n_steps + 1)), 8)
        if tm_even >= 8:
            tm = tm_even
    return tm


def bert_classifier_forward(x, weight, bias, *, block_m=512, compute_dtype=None):
    """relu(dropout_eval(x) @ weight.T + bias)  (dropout in eval mode = identity).

    x      : [B, 768]              activations
    weight : [output_size, 768]    PyTorch nn.Linear layout (untransposed)
    bias   : [output_size]
    compute_dtype : optional narrow dtype (e.g. jnp.bfloat16) used for the MXU
                    inputs (cast in-kernel); accumulation / epilogue stay f32.
    """
    B, K = x.shape
    N, K_w = weight.shape
    assert K == K_w == 768, "embedding dim must be 768"

    # Cap the tile so v5e's 16 MiB default scoped VMEM (2 double-buffered
    # x tiles + resident weight + output) is never exceeded; 512-1024 is the
    # flat part of the HBM-roofline tiling curve anyway.
    block_m = min(block_m, 1024)
    tm = _choose_batch_tile(B, block_m)
    grid = (pl.cdiv(B, tm),)          # partial last block handled by Pallas

    b2d = bias.reshape(1, N)          # 2-D for TPU layout

    cost = pl.CostEstimate(
        flops=2 * B * K * N,
        transcendentals=0,
        bytes_accessed=(x.dtype.itemsize * B * K
                        + weight.dtype.itemsize * N * K
                        + x.dtype.itemsize * B * N),
    )

    kernel = functools.partial(_bert_classifier_kernel,
                               compute_dtype=compute_dtype)

    return pl.pallas_call(
        kernel,
        out_shape=jax.ShapeDtypeStruct((B, N), x.dtype),
        grid=grid,
        in_specs=[
            pl.BlockSpec((tm, K), lambda i: (i, 0)),  # activations, tiled on B
            pl.BlockSpec((N, K), lambda i: (0, 0)),   # weight, resident, lane-dense
            pl.BlockSpec((1, N), lambda i: (0, 0)),   # bias, resident
        ],
        out_specs=pl.BlockSpec((tm, N), lambda i: (i, 0)),
        compiler_params=pltpu.CompilerParams(
            # Shards batch tiles across TCs on v7x; near no-op on v5e/v6e.
            dimension_semantics=("parallel",),
        ),
        cost_estimate=cost,
    )(x, weight, b2d)


def _reference(x, weight, bias):
    # dropout (eval) = identity; linear; relu
    return jnp.maximum(x @ weight.T + bias, 0.0)


if __name__ == "__main__":
    key = jax.random.PRNGKey(0)
    k_x, k_w, k_b = jax.random.split(key, 3)

    batch = 8
    embedding = 768        # fixed by the module (nn.Linear(768, output_size))
    output_size = 32       # args['output_size'] -- small synthetic value

    x = jax.random.normal(k_x, (batch, embedding), dtype=jnp.float32)
    # Deterministic parameter init (synthetic, ~ PyTorch Linear uniform scale)
    bound = 1.0 / (embedding ** 0.5)
    weight = jax.random.uniform(
        k_w, (output_size, embedding), minval=-bound, maxval=bound,
        dtype=jnp.float32)
    bias = jax.random.uniform(
        k_b, (output_size,), minval=-bound, maxval=bound, dtype=jnp.float32)

    out = bert_classifier_forward(x, weight, bias)
    out = jax.block_until_ready(out)

    ref = _reference(x, weight, bias)
    assert out.shape == (batch, output_size)
    assert jnp.allclose(out, ref, atol=1e-4, rtol=1e-4), "mismatch vs reference"

    print("KERNEL_OK")
</pallas_src>

<mosaic_0001>
module attributes {stable_mosaic.version = 11 : i64} {
  func.func @_bert_classifier_kernel(%arg0: i32, %arg1: memref<8x768xf32, #tpu.memory_space<vmem>>, %arg2: memref<32x768xf32, #tpu.memory_space<vmem>>, %arg3: memref<1x32xf32, #tpu.memory_space<vmem>>, %arg4: memref<8x32xf32, #tpu.memory_space<vmem>>) attributes {dimension_semantics = [#tpu.dimension_semantics<parallel>], iteration_bounds = array<i64: 1>, scalar_prefetch = 0 : i64, scratch_operands = 0 : i64, tpu.core_type = #tpu.core_type<tc>, window_params = [{transform_indices = @transform_0, window_bounds = array<i64: 8, 768>}, {pipeline_mode = #tpu.pipeline_mode<synchronous>, transform_indices = @transform_1, window_bounds = array<i64: 32, 768>}, {pipeline_mode = #tpu.pipeline_mode<synchronous>, transform_indices = @transform_2, window_bounds = array<i64: 1, 32>}, {transform_indices = @transform_3, window_bounds = array<i64: 8, 32>}]} {
    %c0 = arith.constant 0 : index
    %c0_0 = arith.constant 0 : index
    %0 = vector.load %arg1[%c0, %c0_0] : memref<8x768xf32, #tpu.memory_space<vmem>>, vector<8x768xf32>
    %c0_1 = arith.constant 0 : index
    %c0_2 = arith.constant 0 : index
    %1 = vector.load %arg2[%c0_1, %c0_2] : memref<32x768xf32, #tpu.memory_space<vmem>>, vector<32x768xf32>
    %cst = arith.constant dense<0.000000e+00> : vector<8x32xf32>
    %2 = tpu.matmul %0, %1, %cst {dimension_numbers = #tpu.dot_dimension_numbers<[1], [1], [0], [0], [0, 0, 1, 0], [], []>} : vector<8x768xf32>, vector<32x768xf32>, vector<8x32xf32> -> vector<8x32xf32>
    %c0_3 = arith.constant 0 : index
    %c0_4 = arith.constant 0 : index
    %3 = vector.load %arg3[%c0_3, %c0_4] : memref<1x32xf32, #tpu.memory_space<vmem>>, vector<1x32xf32>
    %4 = vector.broadcast %3 : vector<1x32xf32> to vector<8x32xf32>
    %5 = arith.addf %2, %4 : vector<8x32xf32>
    %cst_5 = arith.constant 0.000000e+00 : f32
    %6 = vector.broadcast %cst_5 : f32 to vector<8x32xf32>
    %7 = arith.maximumf %5, %6 : vector<8x32xf32>
    %c0_6 = arith.constant 0 : index
    %c0_7 = arith.constant 0 : index
    %8 = vector.load %arg4[%c0_6, %c0_7] : memref<8x32xf32, #tpu.memory_space<vmem>>, vector<8x32xf32>
    tpu.vector_store %arg4[%c0_6, %c0_7], %7 {strides = array<i32>} : memref<8x32xf32, #tpu.memory_space<vmem>>, vector<8x32xf32>,
    return
  }
  func.func @transform_0(%arg0: i32) -> (i32, i32) {
    %c0_i32 = arith.constant 0 : i32
    %c0_i32_0 = arith.constant 0 : i32
    return %arg0, %c0_i32 : i32, i32
  }
  func.func @transform_1(%arg0: i32) -> (i32, i32) {
    %c0_i32 = arith.constant 0 : i32
    %c0_i32_0 = arith.constant 0 : i32
    %c0_i32_1 = arith.constant 0 : i32
    return %c0_i32, %c0_i32_0 : i32, i32
  }
  func.func @transform_2(%arg0: i32) -> (i32, i32) {
    %c0_i32 = arith.constant 0 : i32
    %c0_i32_0 = arith.constant 0 : i32
    %c0_i32_1 = arith.constant 0 : i32
    return %c0_i32, %c0_i32_0 : i32, i32
  }
  func.func @transform_3(%arg0: i32) -> (i32, i32) {
    %c0_i32 = arith.constant 0 : i32
    %c0_i32_0 = arith.constant 0 : i32
    return %arg0, %c0_i32 : i32, i32
  }
}

</mosaic_0001>

<bundles_post_ra>
// kernel: tpu_custom_call.1
= control target key start
LH: loop header
LB: loop body
LE: loop exit
PB: predicated region body
PF: predicated region fallthrough
CT: control target
= control target key end

     0   :  { %8 = vsyncpa [#allocation3], 0  ;;  %s484_s0 = inlined_call_operand.hbm [shape: f32[8,768], index: 0, kind: input, shape index: {}]   ;;  %s485_s1 = inlined_call_operand.hbm [shape: f32[32,768], index: 1, kind: input, shape index: {}]   ;;  %s486_s2 = inlined_call_operand.vmem [shape: f32[1,32], index: 2, kind: input, shape index: {}]   ;;  %s487_s3 = inlined_call_operand.hbm [shape: f32[8,32], index: 3, kind: output, shape index: {}]  }
   0x1   :  { %9 = vsyncpa [#allocation6], 0 }
   0x2   :  { %10 = vsyncpa [#allocation4], 0  ;;  %s413_s12 = smov [#allocation2]   ;;  %s414_s14 = smov [#allocation5]  }
   0x3   :  { %s17_s13 = sshll.u32 %s413_s12, 4  ;;  %s26_s15 = sshll.u32 %s414_s14, 4  ;;  %s18_s13 = int_to_ptr.vmem [resolvable:$true] %s17_s13  ;;  %s438_s15 = int_to_ptr.vmem [resolvable:$true] %s26_s15 }
   0x4   :  { %s341_s18 = scalar_lea.hbm %s484_s0, 768 }
   0x5   :  { %p342_p0 = scmp.ne.s32.totalorder %s484_s0, %s341_s18  ;;  %p345_p1 = scmp.lt.u32.totalorder %s341_s18, %s484_s0 }
   0x7   :  { %p347_p2 = pnand %p345_p1, %p342_p0 }
   0x9   :  { %350 = shalt.err (!%p347_p2)
}
   0xa   :  { %s351_s23 = scalar_lea.vmem %s18_s13, 768  ;;  %p356_p4 = scmp.lt.s32.totalorder %s18_s13, %s18_s13 }
   0xb   :  { %p352_p3 = scmp.ne.s32.totalorder %s18_s13, %s351_s23  ;;  %p357_p5 = scmp.lt.s32.totalorder %s351_s23, %s351_s23 }
   0xd   :  { %p358_p6 = por %p357_p5, %p356_p4 }
   0xf   :  { %p359_p7 = pnand %p358_p6, %p352_p3 }
  0x11   :  { %362 = shalt.err (!%p359_p7)
}
  0x12   :  { %20 = dma.hbm_to_vmem [thread:$0]  %s484_s0, 768, %s18_s13, [#allocation3]  }
  0x13   :  { %s363_s28 = scalar_lea.hbm %s485_s1, 3072 }
  0x14   :  { %p364_p8 = scmp.ne.s32.totalorder %s485_s1, %s363_s28  ;;  %p367_p9 = scmp.lt.u32.totalorder %s363_s28, %s485_s1 }
  0x16   :  { %p369_p10 = pnand %p367_p9, %p364_p8 }
  0x18   :  { %372 = shalt.err (!%p369_p10)
}
  0x19   :  { %s373_s6 = scalar_lea.vmem %s438_s15, 3072  ;;  %p378_p12 = scmp.lt.s32.totalorder %s438_s15, %s438_s15 }
  0x1a   :  { %p374_p11 = scmp.ne.s32.totalorder %s438_s15, %s373_s6  ;;  %p379_p13 = scmp.lt.s32.totalorder %s373_s6, %s373_s6 }
  0x1c   :  { %p380_p0 = por %p379_p13, %p378_p12 }
  0x1e   :  { %p381_p1 = pnand %p380_p0, %p374_p11 }
  0x20   :  { %384 = shalt.err (!%p381_p1)
}
  0x21   :  { %s415_s0 = smov 768   ;;  %s416_s7 = smov 48  }
  0x22   :  { %32 = dma.hbm_to_vmem [thread:$0]  %s485_s1, 3072, %s438_s15, [#allocation6], %s415_s0, %s415_s0, %s416_s7  }
  0x23   :  { %407 = dma.done.wait [#allocation3], 768  }
  0x24   :  { %408 = vsyncadd [#allocation3], 4294966528 }
  0x25   :  { %409 = dma.done.wait [#allocation6], 3072  }
  0x26   :  { %410 = vsyncadd [#allocation6], 4294964224  ;;  %v50_v0 = vld [vmem:[#allocation5 + $0x18] sm:$0xff]  ;;  %v56_v1 = vld [vmem:[#allocation5 + $0x48] sm:$0xff]  ;;  %s417_s11 = smov [#allocation7]   ;;  %vm289_vm0 = vcmask 261120  }
  0x27   :  { %v49_v2 = vld [vmem:[#allocation5 + $0x10] sm:$0xff]  ;;  %v316_v3 = vpack.c.bf16 %v56_v1, %v50_v0  ;;  %v55_v4 = vld [vmem:[#allocation5 + $0x40] sm:$0xff]  ;;  %v62_v5 = vld [vmem:[#allocation5 + $0x78] sm:$0xff]  ;;  %s297_s12 = sshll.u32 %s417_s11, 4  ;;  %s298_s12 = int_to_ptr.vmem [resolvable:$true] %s297_s12 }
  0x28   :  { %v68_v6 = vld [vmem:[#allocation5 + $0xa8] sm:$0xff]  ;;  %v318_v7 = vpack.c.bf16 %v55_v4, %v49_v2  ;;  %v54_v10 = vld [vmem:[#allocation5 + $0x38] sm:$0xff]  ;;  %v47_v11 = vld [vmem:[#allocation5] sm:$0xff]  ;;  %s385_s13 = scalar_lea.vmem %s298_s12, 128  ;;  %p390_p3 = scmp.lt.s32.totalorder %s298_s12, %s298_s12 }
  0x29   :  { %v320_v8 = vpack.c.bf16 %v68_v6, %v62_v5  ;;  %v48_v9 = vld [vmem:[#allocation5 + $0x8] sm:$0xff]  ;;  %317 = vmatprep.subr.bf16.mxu0 %v316_v3  ;;  %v53_v12 = vld [vmem:[#allocation5 + $0x30] sm:$0xff]  ;;  %v67_v17 = vld [vmem:[#allocation5 + $0xa0] sm:$0xff]  ;;  %p386_p2 = scmp.ne.s32.totalorder %s298_s12, %s385_s13  ;;  %p391_p4 = scmp.lt.s32.totalorder %s385_s13, %s385_s13 }
  0x2a   :  { %319 = vmatpush1.bf16.xpose.msra.mxu0 %v318_v7  ;;  %v308_v13 = vpack.c.bf16 %v54_v10, %v48_v9  ;;  %v310_v14 = vpack.c.bf16 %v53_v12, %v47_v11  ;;  %v44_v15 = vld [vmem:[#allocation2 + $0x18] sm:$0xff]  ;;  %v61_v16 = vld [vmem:[#allocation5 + $0x70] sm:$0xff]  ;;  %v58_v19 = vld [vmem:[#allocation5 + $0x58] sm:$0xff] }
  0x2b   :  { %321 = vmatprep.subr.bf16.mxu0 %v320_v8  ;;  %212 = vmatprep.mubr.f32.mxu0 %v44_v15  ;;  %v52_v18 = vld [vmem:[#allocation5 + $0x28] sm:$0xff]  ;;  %v66_v21 = vld [vmem:[#allocation5 + $0x98] sm:$0xff]  ;;  %v322_v23 = vpack.c.bf16 %v67_v17, %v61_v16  ;;  %v59_v24 = vld [vmem:[#allocation5 + $0x60] sm:$0xff]  ;;  %p392_p5 = por %p391_p4, %p390_p3 }
  0x2c   :  { %309 = vmatprep.subr.bf16.mxu1 %v308_v13  ;;  %v60_v20 = vld [vmem:[#allocation5 + $0x68] sm:$0xff]  ;;  %v65_v25 = vld [vmem:[#allocation5 + $0x90] sm:$0xff]  ;;  %v42_v26 = vld [vmem:[#allocation2 + $0x8] sm:$0xff]  ;;  %v324_v27 = vpack.c.bf16 %v58_v19, %v52_v18 }
  0x2d   :  { %311 = vmatpush1.bf16.xpose.msra.mxu1 %v310_v14  ;;  %v312_v22 = vpack.c.bf16 %v66_v21, %v60_v20  ;;  %142 = vmatprep.mubr.f32.mxu1 %v42_v26  ;;  %v314_v28 = vpack.c.bf16 %v65_v25, %v59_v24  ;;  %v51_v29 = vld [vmem:[#allocation5 + $0x20] sm:$0xff]  ;;  %v57_v30 = vld [vmem:[#allocation5 + $0x50] sm:$0xff]  ;;  %v64_v31 = vld [vmem:[#allocation5 + $0x88] sm:$0xff]  ;;  %p393_p6 = pnand %p392_p5, %p386_p2 }
  0x2e   :  { %v70_v32 = vld [vmem:[#allocation5 + $0xb8] sm:$0xff]  ;;  %v43_v33 = vld [vmem:[#allocation2 + $0x10] sm:$0xff]  ;;  %v326_v34 = vpack.c.bf16 %v57_v30, %v51_v29  ;;  %v41_v37 = vld [vmem:[#allocation2] sm:$0xff] }
  0x2f   :  { %313 = vmatprep.subr.bf16.mxu1 %v312_v22  ;;  %v328_v35 = vpack.c.bf16 %v70_v32, %v64_v31  ;;  %v46_v36 = vld [vmem:[#allocation2 + $0x28] sm:$0xff]  ;;  %v63_v38 = vld [vmem:[#allocation5 + $0x80] sm:$0xff]  ;;  %v69_v39 = vld [vmem:[#allocation5 + $0xb0] sm:$0xff] }
  0x30   :  { %v330_v40 = vpack.c.bf16 %v69_v39, %v63_v38  ;;  %v45_v41 = vld [vmem:[#allocation2 + $0x20] sm:$0xff] }
  0x31   :  { %v307_v44 = vld [vmem:[%s486_s2] ss:$0 sm:$0xff] }
  0x32   :  { %323 = vmatpush1.bf16.xpose.msra.mxu0 %v322_v23 }
  0x33   :  { %325 = vmatprep.subr.bf16.mxu0 %v324_v27 }
  0x35   :  { %315 = vmatpush1.bf16.xpose.msra.mxu1 %v314_v28 }
  0x39   :  { %213 = vmatmul.mubr.f32.vlgmr.msra.gmra.mrb[0].mxu0 %v43_v33 }
  0x3a   :  { %327 = vmatpush1.bf16.xpose.msra.mxu0 %v326_v34  ;;  %282 = vmatprep.mubr.f32.mxu0 %v46_v36 }
  0x3b   :  { %329 = vmatprep.subr.bf16.mxu0 %v328_v35 }
  0x3c   :  { %143 = vmatmul.mubr.f32.vlgmr.msra.gmra.mrb[0].mxu1 %v41_v37 }
  0x42   :  { %331 = vmatpush1.bf16.xpose.msra.mxu0 %v330_v40 }
  0x49   :  { %283 = vmatmul.mubr.f32.vlgmr.msra.gmra.mrb[0].mxu0 %v45_v41 }
 0x10f   :  { %v144_v42 = vpop.f32.mrb[0].mxu1 }
 0x110   :  { %v146_v43 = vpop.f32.mrb[1].mxu1  ;;  %v145_v45 = vadd.f32 %v307_v44, %v144_v42 }
 0x11c   :  { %v284_v46 = vpop.f32.mrb[0].mxu0 }
 0x11d   :  { %v333_v47 = vadd.f32 %v284_v46, %v145_v45  ;;  %v286_v48 = vpop.f32.mrb[1].mxu0 }
 0x11f   :  { %v288_v49 = vmax.f32 %v333_v47, 0.0 }
 0x121   :  { %290 = vst.msk [vmem:[#allocation7] sm:$0xff] %vm289_vm0, %v288_v49 }
 0x122   :  { %396 = shalt.err (!%p393_p6)
}
 0x123   :  { %s397_s2 = scalar_lea.hbm %s487_s3, 128 }
 0x124   :  { %p398_p7 = scmp.ne.s32.totalorder %s487_s3, %s397_s2  ;;  %p401_p8 = scmp.lt.u32.totalorder %s397_s2, %s487_s3 }
 0x126   :  { %p403_p9 = pnand %p401_p8, %p398_p7 }
 0x128   :  { %406 = shalt.err (!%p403_p9)
}
 0x129   :  { %300 = dma.vmem_to_hbm [thread:$0]  %s298_s12, 128, %s487_s3, [#allocation4]  }
 0x12a   :  { %411 = dma.done.wait [#allocation4], 128  }
 0x12b   :  { %412 = vsyncadd [#allocation4], 4294967168 }
 0x12c   :  { %304 = vsyncpa [#allocation3], 1 }
 0x12d   :  { %305 = vsyncpa [#allocation6], 1 }
 0x12e   :  { %306 = vsyncpa [#allocation4], 1 }

</bundles_post_ra>
